<compile_context>
chip_gen: v6e
topology: v6e:2x2x1
jax: 0.10.0
libtpu: 0.0.40
codegen_flags: <defaults>
</compile_context>

<pallas_src>
import functools

import jax
import jax.numpy as jnp
import numpy as np
from jax.experimental import pallas as pl
from jax.experimental.pallas import tpu as pltpu

_LANE = 128
_MIB = 1024 * 1024


def _vmem_capacity_bytes():
    try:
        info = pltpu.get_tpu_info()
        cap = getattr(info, "vmem_capacity_bytes", None)
        if cap:
            return int(cap)
    except Exception:
        pass
    return 64 * _MIB  # conservative (v7x-sized) fallback


def _cores_per_device():
    # "parallel" grid axes shard across TensorCores on megacore parts.
    try:
        kind = jax.devices()[0].device_kind.lower()
    except Exception:
        return 1
    return 2 if any(t in kind for t in ("v7", "tpu7", "v4", "v5p")) else 1


# ----------------------------------------------------------------------------
# single-pass kernel: whole (bt, N, Dp) slab resident per grid step
# ----------------------------------------------------------------------------
def _single_pass_kernel(alpha_ref, beta_ref, w_ref, feat_ref, out_ref):
    feat = feat_ref[...]                                   # (bt, N, Dp), native dtype
    n = feat.shape[1]
    inv_n = 1.0 / n

    # adaptive_avg_pool1d over tokens, accumulated in f32 -> (bt, Dp)
    g_mean = jnp.sum(feat, axis=1, dtype=jnp.float32) * inv_n

    # Conv1d(D, D, 1, bias=False): g = g_mean @ W^T; W^T is passed pre-transposed
    # so this is a standard sublane-contracting MXU matmul.
    g = jnp.dot(g_mean.astype(w_ref.dtype), w_ref[...],
                preferred_element_type=jnp.float32)        # (bt, Dp) f32

    # atten[b, t] = <feat[b, t, :], g[b, :]> -> (bt, N, 1), f32 accumulation.
    if feat.dtype == jnp.float32:
        atten = jnp.sum(feat * g[:, None, :], axis=-1, keepdims=True)
    else:
        # low-precision activations: use the (otherwise idle) MXU, f32 accumulate
        atten = jnp.einsum("bnd,bkd->bnk", feat,
                           g[:, None, :].astype(feat.dtype),
                           preferred_element_type=jnp.float32)

    # per-batch mean / population std over the N scores (unbiased=False)
    m = jnp.sum(atten, axis=1, keepdims=True) * inv_n      # (bt, 1, 1)
    var = jnp.sum((atten - m) ** 2, axis=1, keepdims=True) * inv_n
    std = jnp.sqrt(var)

    # fold alpha/(std+eps) and beta - m*scale into per-batch scalars (1 FMA/score)
    scale = alpha_ref[0] / (std + 1e-5)
    shift = beta_ref[0] - m * scale
    atten_n = atten * scale + shift

    # residual add in the native dtype (no persistent f32 copy of feat)
    out_ref[...] = feat + (atten_n * g[:, None, :]).astype(out_ref.dtype)


# ----------------------------------------------------------------------------
# two-pass (N-tiled) fallback kernels: batch block of 1, token chunks of tn
# ----------------------------------------------------------------------------
def _stats_kernel(feat_ref, sum_ref, gram_ref, *, n_total, tn):
    @pl.when(pl.program_id(1) == 0)
    def _():
        sum_ref[...] = jnp.zeros_like(sum_ref)
        gram_ref[...] = jnp.zeros_like(gram_ref)

    feat = feat_ref[...]                                   # (1, tn, Dp)
    if n_total % tn != 0:
        # zero out-of-bounds token rows of the ragged last chunk before reducing
        n_valid = n_total - pl.program_id(1) * tn
        row = jax.lax.broadcasted_iota(jnp.int32, feat.shape, 1)
        feat = jnp.where(row < n_valid, feat, jnp.zeros_like(feat))

    sum_ref[...] += jnp.sum(feat, axis=1, keepdims=True, dtype=jnp.float32)

    f2 = feat[0]                                           # (tn, Dp); batch block is 1
    gram_ref[...] += jax.lax.dot_general(                  # f2^T @ f2 -> (Dp, Dp)
        f2, f2, dimension_numbers=(((0,), (0,)), ((), ())),
        preferred_element_type=jnp.float32)[None]


def _apply_kernel(scale_ref, shift_ref, g_ref, feat_ref, out_ref):
    b = pl.program_id(0)                                   # batch block is 1
    feat = feat_ref[...]                                   # (1, tn, Dp)
    g = g_ref[...][:, 0, :]                                # (1, Dp) f32

    if feat.dtype == jnp.float32:
        atten = jnp.sum(feat * g[:, None, :], axis=-1, keepdims=True)
    else:
        atten = jnp.einsum("bnd,bkd->bnk", feat,
                           g[:, None, :].astype(feat.dtype),
                           preferred_element_type=jnp.float32)

    atten_n = atten * scale_ref[b] + shift_ref[b]
    out_ref[...] = feat + (atten_n * g[:, None, :]).astype(out_ref.dtype)


def _two_pass(feat_p, w_t, alpha, beta, d_orig, Dp, budget, vmem_cap_limit,
              token_block):
    B, N, _ = feat_p.shape
    itemsize = feat_p.dtype.itemsize
    bt = 1

    gram_cost = 2 * Dp * Dp * 4                     # double-buffered f32 Gram out
    per_token = (4 * itemsize + 2 * 4) * Dp         # in/out dbuf + ~2 f32 work temps
    if token_block is not None:
        tn = int(token_block)
    else:
        tn = max(8, int((budget - gram_cost) // per_token))
    if tn >= N:
        tn = N
    elif tn % 8 != 0:
        tn = max(8, (tn // 8) * 8)
    grid_n = pl.cdiv(N, tn)

    need = per_token * tn + gram_cost + (1 << 20)
    vmem_limit = int(min(vmem_cap_limit, max(32 * _MIB, 2 * need)))

    # ---- pass 1: per-batch token sum and Gram matrix ------------------------
    sums, gram = pl.pallas_call(
        functools.partial(_stats_kernel, n_total=N, tn=tn),
        out_shape=(jax.ShapeDtypeStruct((B, 1, Dp), jnp.float32),
                   jax.ShapeDtypeStruct((B, Dp, Dp), jnp.float32)),
        grid=(B, grid_n),
        in_specs=[pl.BlockSpec((bt, tn, Dp), lambda b, n: (b, n, 0))],
        out_specs=[pl.BlockSpec((bt, 1, Dp), lambda b, n: (b, 0, 0)),
                   pl.BlockSpec((bt, Dp, Dp), lambda b, n: (b, 0, 0))],
        compiler_params=pltpu.CompilerParams(
            dimension_semantics=("parallel", "arbitrary"),
            vmem_limit_bytes=vmem_limit),
    )(feat_p)

    # ---- tiny per-batch stats glue (O(B*Dp^2), plain XLA) --------------------
    g_mean = sums[:, 0, :] / N                              # (B, Dp) f32
    g = g_mean @ w_t.astype(jnp.float32)                    # (B, Dp) f32
    mean_a = jnp.sum(g_mean * g, axis=-1)                   # E[atten]   (B,)
    e_a2 = jnp.einsum("bd,bde,be->b", g, gram, g) / N       # E[atten^2] (B,)
    var = jnp.maximum(e_a2 - mean_a * mean_a, 0.0)
    std = jnp.sqrt(var)
    scale = (alpha[0] / (std + 1e-5)).astype(jnp.float32)   # (B,)
    shift = (beta[0] - mean_a * scale).astype(jnp.float32)  # (B,)
    g3 = g.reshape(B, 1, Dp)

    # ---- pass 2: recompute scores per chunk, normalize, residual write -------
    out_p = pl.pallas_call(
        _apply_kernel,
        out_shape=jax.ShapeDtypeStruct((B, N, Dp), feat_p.dtype),
        grid=(B, grid_n),
        in_specs=[pl.BlockSpec(memory_space=pltpu.SMEM),            # scale (B,)
                  pl.BlockSpec(memory_space=pltpu.SMEM),            # shift (B,)
                  pl.BlockSpec((bt, 1, Dp), lambda b, n: (b, 0, 0)),
                  pl.BlockSpec((bt, tn, Dp), lambda b, n: (b, n, 0))],
        out_specs=pl.BlockSpec((bt, tn, Dp), lambda b, n: (b, n, 0)),
        compiler_params=pltpu.CompilerParams(
            dimension_semantics=("parallel", "parallel"),
            vmem_limit_bytes=vmem_limit),
    )(scale, shift, g3, feat_p)

    return out_p[..., :d_orig] if Dp != d_orig else out_p


# ----------------------------------------------------------------------------
# wrapper
# ----------------------------------------------------------------------------
def global_enhance_v2(feat, w, alpha, beta, *, force_two_pass=False,
                      max_batch_block=None, token_block=None):
    """feat: (B, N, D); w: Conv1d weight (D_out, D_in); alpha, beta: (1,)."""
    B, N, D = feat.shape

    # Channel padding only when D < 128 (lane-dense-store win); for D >= 128 the
    # full D is a legal block dim and we skip the extra pad/slice HBM passes.
    Dp = _LANE if D < _LANE else D
    if Dp != D:
        feat_p = jnp.pad(feat, ((0, 0), (0, 0), (0, Dp - D)))
        w_p = jnp.pad(w, ((0, Dp - D), (0, Dp - D)))
    else:
        feat_p, w_p = feat, w
    w_t = jnp.transpose(w_p)                       # pre-transpose once (wrapper)

    itemsize = feat_p.dtype.itemsize
    w_itemsize = w_t.dtype.itemsize

    # generation-aware VMEM budget
    vmem_cap = _vmem_capacity_bytes()
    budget = int(0.55 * vmem_cap)                  # ~70 MiB v5e/v6e, ~35 MiB v7x
    vmem_cap_limit = int(min(100 * _MIB, int(0.75 * vmem_cap)))
    cores = _cores_per_device()

    # per batch row: 2x(in) + 2x(out) double-buffered tiles + ~2 f32 work temps
    per_batch = (4 * itemsize + 2 * 4) * N * Dp
    w_cost = Dp * Dp * w_itemsize                  # single-buffered resident W^T

    if force_two_pass or per_batch > (budget - 2 * w_cost):
        return _two_pass(feat_p, w_t, alpha, beta, D, Dp, budget,
                         vmem_cap_limit, token_block)

    bt = max(1, int((budget - 2 * w_cost) // per_batch))
    if max_batch_block is not None:
        bt = min(bt, int(max_batch_block))
    bt = int(min(bt, B))
    grid_b = pl.cdiv(B, bt)

    if cores > 1 and B > 1:
        # give every TensorCore work and keep the step count a multiple of the
        # core count (avoid an idle core on the tail step)
        bt = int(min(bt, pl.cdiv(B, cores)))
        grid_b = pl.cdiv(B, bt)
        if grid_b % cores != 0:
            for cand in range(bt, 0, -1):
                g_steps = pl.cdiv(B, cand)
                if g_steps > 2 * grid_b:
                    break
                if g_steps % cores == 0:
                    bt, grid_b = cand, g_steps
                    break

    need = (2 * 2 * itemsize + 2 * 4) * bt * N * Dp + 2 * w_cost + (1 << 20)
    vmem_limit = int(min(vmem_cap_limit, max(32 * _MIB, 2 * need)))

    cost = pl.CostEstimate(
        flops=int(2 * B * Dp * Dp + 4 * B * N * Dp + 8 * B * N),
        transcendentals=int(B),
        bytes_accessed=int(2 * B * N * Dp * itemsize + Dp * Dp * w_itemsize),
    )

    def run(single_buffer_w):
        w_kwargs = {"pipeline_mode": pl.Buffered(1)} if single_buffer_w else {}
        in_specs = [
            pl.BlockSpec(memory_space=pltpu.SMEM),                 # alpha (1,)
            pl.BlockSpec(memory_space=pltpu.SMEM),                 # beta  (1,)
            pl.BlockSpec((Dp, Dp), lambda b: (0, 0), **w_kwargs),  # resident W^T
            pl.BlockSpec((bt, N, Dp), lambda b: (b, 0, 0)),        # feat block
        ]
        return pl.pallas_call(
            _single_pass_kernel,
            out_shape=jax.ShapeDtypeStruct((B, N, Dp), feat_p.dtype),
            grid=(grid_b,),
            in_specs=in_specs,
            out_specs=pl.BlockSpec((bt, N, Dp), lambda b: (b, 0, 0)),
            compiler_params=pltpu.CompilerParams(
                dimension_semantics=("parallel",),
                vmem_limit_bytes=vmem_limit,
            ),
            cost_estimate=cost,
        )(alpha, beta, w_t, feat_p)

    try:
        out_p = run(True)       # single-buffer the constant-index weight block
    except Exception:
        out_p = run(False)      # fall back to the default double buffer

    return out_p[..., :D] if Dp != D else out_p


def _reference(feat, w, alpha, beta):
    g_mean = jnp.mean(feat, axis=1)                        # (B, D)
    g = g_mean @ w.T                                       # (B, D)
    atten = jnp.einsum("bnd,bd->bn", feat, g)              # (B, N)
    m = atten.mean(-1, keepdims=True)
    std = jnp.sqrt(((atten - m) ** 2).mean(-1, keepdims=True))
    atten_n = alpha[0] * (atten - m) / (std + 1e-5) + beta[0]
    return feat + atten_n[..., None] * g[:, None, :]


if __name__ == "__main__":
    D = 32
    key = jax.random.PRNGKey(0)
    k_w, k1, k2, k3 = jax.random.split(key, 4)

    bound = 1.0 / np.sqrt(D)
    w = jax.random.uniform(k_w, (D, D), dtype=jnp.float32,
                           minval=-bound, maxval=bound)
    alpha = jnp.ones((1,), dtype=jnp.float32)   # Parameter init: [1.]
    beta = jnp.zeros((1,), dtype=jnp.float32)   # Parameter init: [0.]

    # 1) primary single-pass path
    feat = jax.random.normal(k1, (2, 8, D), dtype=jnp.float32)
    out = global_enhance_v2(feat, w, alpha, beta)
    jax.block_until_ready(out)
    np.testing.assert_allclose(np.asarray(out),
                               np.asarray(_reference(feat, w, alpha, beta)),
                               rtol=1e-4, atol=1e-4)

    # 2) ragged last batch block (B=3 with batch block capped at 2)
    feat_r = jax.random.normal(k2, (3, 8, D), dtype=jnp.float32)
    out_r = global_enhance_v2(feat_r, w, alpha, beta, max_batch_block=2)
    jax.block_until_ready(out_r)
    np.testing.assert_allclose(np.asarray(out_r),
                               np.asarray(_reference(feat_r, w, alpha, beta)),
                               rtol=1e-4, atol=1e-4)

    # 3) forced N-tiled two-pass path with a ragged token chunk (N=20, tn=8)
    feat_t = jax.random.normal(k3, (2, 20, D), dtype=jnp.float32)
    out_t = global_enhance_v2(feat_t, w, alpha, beta,
                              force_two_pass=True, token_block=8)
    jax.block_until_ready(out_t)
    np.testing.assert_allclose(np.asarray(out_t),
                               np.asarray(_reference(feat_t, w, alpha, beta)),
                               rtol=1e-3, atol=1e-3)

    print("KERNEL_OK")
</pallas_src>

<mosaic_0001>
module attributes {stable_mosaic.version = 11 : i64} {
  func.func @_single_pass_kernel(%arg0: i32, %arg1: memref<1xf32, #tpu.memory_space<smem>>, %arg2: memref<1xf32, #tpu.memory_space<smem>>, %arg3: memref<128x128xf32, #tpu.memory_space<vmem>>, %arg4: memref<2x8x128xf32, #tpu.memory_space<vmem>>, %arg5: memref<2x8x128xf32, #tpu.memory_space<vmem>>) attributes {dimension_semantics = [#tpu.dimension_semantics<parallel>], iteration_bounds = array<i64: 1>, scalar_prefetch = 0 : i64, scratch_operands = 0 : i64, tpu.core_type = #tpu.core_type<tc>, window_params = [{transform_indices = @transform_0, window_bounds = array<i64: 1>}, {transform_indices = @transform_1, window_bounds = array<i64: 1>}, {pipeline_mode = #tpu.pipeline_mode<synchronous>, transform_indices = @transform_2, window_bounds = array<i64: 128, 128>}, {transform_indices = @transform_3, window_bounds = array<i64: 2, 8, 128>}, {transform_indices = @transform_4, window_bounds = array<i64: 2, 8, 128>}]} {
    %c0 = arith.constant 0 : index
    %c0_0 = arith.constant 0 : index
    %c0_1 = arith.constant 0 : index
    %0 = vector.load %arg4[%c0, %c0_0, %c0_1] : memref<2x8x128xf32, #tpu.memory_space<vmem>>, vector<2x8x128xf32>
    %cst = arith.constant dense<0.000000e+00> : vector<2x128xf32>
    %1 = vector.multi_reduction <add>, %0, %cst [1] : vector<2x8x128xf32> to vector<2x128xf32>
    %cst_2 = arith.constant 1.250000e-01 : f32
    %2 = vector.broadcast %cst_2 : f32 to vector<2x128xf32>
    %3 = arith.mulf %1, %2 : vector<2x128xf32>
    %c0_3 = arith.constant 0 : index
    %c0_4 = arith.constant 0 : index
    %4 = vector.load %arg3[%c0_3, %c0_4] : memref<128x128xf32, #tpu.memory_space<vmem>>, vector<128x128xf32>
    %cst_5 = arith.constant dense<0.000000e+00> : vector<2x128xf32>
    %5 = tpu.matmul %3, %4, %cst_5 {dimension_numbers = #tpu.dot_dimension_numbers<[1], [0], [0], [1], [0, 0, 1, 1], [], []>} : vector<2x128xf32>, vector<128x128xf32>, vector<2x128xf32> -> vector<2x128xf32>
    %6 = vector.shape_cast %5 : vector<2x128xf32> to vector<2x1x128xf32>
    %7 = vector.broadcast %6 : vector<2x1x128xf32> to vector<2x8x128xf32>
    %8 = arith.mulf %0, %7 : vector<2x8x128xf32>
    %cst_6 = arith.constant dense<0.000000e+00> : vector<2x8xf32>
    %9 = vector.multi_reduction <add>, %8, %cst_6 [2] : vector<2x8x128xf32> to vector<2x8xf32>
    %10 = vector.shape_cast %9 : vector<2x8xf32> to vector<2x8x1xf32>
    %cst_7 = arith.constant dense<0.000000e+00> : vector<2x1xf32>
    %11 = vector.multi_reduction <add>, %10, %cst_7 [1] : vector<2x8x1xf32> to vector<2x1xf32>
    %12 = vector.shape_cast %11 : vector<2x1xf32> to vector<2x1x1xf32>
    %cst_8 = arith.constant 1.250000e-01 : f32
    %13 = vector.broadcast %cst_8 : f32 to vector<2x1x1xf32>
    %14 = arith.mulf %12, %13 : vector<2x1x1xf32>
    %15 = vector.broadcast %14 : vector<2x1x1xf32> to vector<2x8x1xf32>
    %16 = arith.subf %10, %15 : vector<2x8x1xf32>
    %17 = arith.mulf %16, %16 : vector<2x8x1xf32>
    %cst_9 = arith.constant dense<0.000000e+00> : vector<2x1xf32>
    %18 = vector.multi_reduction <add>, %17, %cst_9 [1] : vector<2x8x1xf32> to vector<2x1xf32>
    %19 = vector.shape_cast %18 : vector<2x1xf32> to vector<2x1x1xf32>
    %cst_10 = arith.constant 1.250000e-01 : f32
    %20 = vector.broadcast %cst_10 : f32 to vector<2x1x1xf32>
    %21 = arith.mulf %19, %20 : vector<2x1x1xf32>
    %22 = math.sqrt %21 : vector<2x1x1xf32>
    %c0_11 = arith.constant 0 : index
    %23 = memref.load %arg1[%c0_11] : memref<1xf32, #tpu.memory_space<smem>>
    %cst_12 = arith.constant 9.99999974E-6 : f32
    %24 = vector.broadcast %cst_12 : f32 to vector<2x1x1xf32>
    %25 = arith.addf %22, %24 : vector<2x1x1xf32>
    %26 = vector.broadcast %23 : f32 to vector<2x1x1xf32>
    %27 = arith.divf %26, %25 : vector<2x1x1xf32>
    %c0_13 = arith.constant 0 : index
    %28 = memref.load %arg2[%c0_13] : memref<1xf32, #tpu.memory_space<smem>>
    %29 = arith.mulf %14, %27 : vector<2x1x1xf32>
    %30 = vector.broadcast %28 : f32 to vector<2x1x1xf32>
    %31 = arith.subf %30, %29 : vector<2x1x1xf32>
    %32 = vector.broadcast %27 : vector<2x1x1xf32> to vector<2x8x1xf32>
    %33 = arith.mulf %10, %32 : vector<2x8x1xf32>
    %34 = vector.broadcast %31 : vector<2x1x1xf32> to vector<2x8x1xf32>
    %35 = arith.addf %33, %34 : vector<2x8x1xf32>
    %36 = vector.shape_cast %5 : vector<2x128xf32> to vector<2x1x128xf32>
    %37 = vector.broadcast %35 : vector<2x8x1xf32> to vector<2x8x128xf32>
    %38 = vector.broadcast %36 : vector<2x1x128xf32> to vector<2x8x128xf32>
    %39 = arith.mulf %37, %38 : vector<2x8x128xf32>
    %40 = arith.addf %0, %39 : vector<2x8x128xf32>
    %c0_14 = arith.constant 0 : index
    %c0_15 = arith.constant 0 : index
    %c0_16 = arith.constant 0 : index
    %41 = vector.load %arg5[%c0_14, %c0_15, %c0_16] : memref<2x8x128xf32, #tpu.memory_space<vmem>>, vector<2x8x128xf32>
    tpu.vector_store %arg5[%c0_14, %c0_15, %c0_16], %40 {strides = array<i32>} : memref<2x8x128xf32, #tpu.memory_space<vmem>>, vector<2x8x128xf32>,
    return
  }
  func.func @transform_0(%arg0: i32) -> i32 {
    %c0_i32 = arith.constant 0 : i32
    %c0_i32_0 = arith.constant 0 : i32
    return %c0_i32 : i32
  }
  func.func @transform_1(%arg0: i32) -> i32 {
    %c0_i32 = arith.constant 0 : i32
    %c0_i32_0 = arith.constant 0 : i32
    return %c0_i32 : i32
  }
  func.func @transform_2(%arg0: i32) -> (i32, i32) {
    %c0_i32 = arith.constant 0 : i32
    %c0_i32_0 = arith.constant 0 : i32
    %c0_i32_1 = arith.constant 0 : i32
    return %c0_i32, %c0_i32_0 : i32, i32
  }
  func.func @transform_3(%arg0: i32) -> (i32, i32, i32) {
    %c0_i32 = arith.constant 0 : i32
    %c0_i32_0 = arith.constant 0 : i32
    %c0_i32_1 = arith.constant 0 : i32
    return %arg0, %c0_i32, %c0_i32_0 : i32, i32, i32
  }
  func.func @transform_4(%arg0: i32) -> (i32, i32, i32) {
    %c0_i32 = arith.constant 0 : i32
    %c0_i32_0 = arith.constant 0 : i32
    %c0_i32_1 = arith.constant 0 : i32
    return %arg0, %c0_i32, %c0_i32_0 : i32, i32, i32
  }
}

module attributes {stable_mosaic.version = 11 : i64} {
  func.func @_single_pass_kernel(%arg0: i32, %arg1: memref<1xf32, #tpu.memory_space<smem>>, %arg2: memref<1xf32, #tpu.memory_space<smem>>, %arg3: memref<128x128xf32, #tpu.memory_space<vmem>>, %arg4: memref<2x8x128xf32, #tpu.memory_space<vmem>>, %arg5: memref<2x8x128xf32, #tpu.memory_space<vmem>>) attributes {dimension_semantics = [#tpu.dimension_semantics<parallel>], iteration_bounds = array<i64: 1>, scalar_prefetch = 0 : i64, scratch_operands = 0 : i64, tpu.core_type = #tpu.core_type<tc>, window_params = [{transform_indices = @transform_0, window_bounds = array<i64: 1>}, {transform_indices = @transform_1, window_bounds = array<i64: 1>}, {pipeline_mode = #tpu.pipeline_mode<synchronous>, transform_indices = @transform_2, window_bounds = array<i64: 128, 128>}, {transform_indices = @transform_3, window_bounds = array<i64: 2, 8, 128>}, {transform_indices = @transform_4, window_bounds = array<i64: 2, 8, 128>}]} {
    %c0 = arith.constant 0 : index
    %c0_0 = arith.constant 0 : index
    %c0_1 = arith.constant 0 : index
    %0 = vector.load %arg4[%c0, %c0_0, %c0_1] : memref<2x8x128xf32, #tpu.memory_space<vmem>>, vector<2x8x128xf32>
    %cst = arith.constant dense<0.000000e+00> : vector<2x128xf32>
    %1 = vector.multi_reduction <add>, %0, %cst [1] : vector<2x8x128xf32> to vector<2x128xf32>
    %cst_2 = arith.constant 1.250000e-01 : f32
    %2 = vector.broadcast %cst_2 : f32 to vector<2x128xf32>
    %3 = arith.mulf %1, %2 : vector<2x128xf32>
    %c0_3 = arith.constant 0 : index
    %c0_4 = arith.constant 0 : index
    %4 = vector.load %arg3[%c0_3, %c0_4] : memref<128x128xf32, #tpu.memory_space<vmem>>, vector<128x128xf32>
    %cst_5 = arith.constant dense<0.000000e+00> : vector<2x128xf32>
    %5 = tpu.matmul %3, %4, %cst_5 {dimension_numbers = #tpu.dot_dimension_numbers<[1], [0], [0], [1], [0, 0, 1, 1], [], []>} : vector<2x128xf32>, vector<128x128xf32>, vector<2x128xf32> -> vector<2x128xf32>
    %6 = vector.shape_cast %5 : vector<2x128xf32> to vector<2x1x128xf32>
    %7 = vector.broadcast %6 : vector<2x1x128xf32> to vector<2x8x128xf32>
    %8 = arith.mulf %0, %7 : vector<2x8x128xf32>
    %cst_6 = arith.constant dense<0.000000e+00> : vector<2x8xf32>
    %9 = vector.multi_reduction <add>, %8, %cst_6 [2] : vector<2x8x128xf32> to vector<2x8xf32>
    %10 = vector.shape_cast %9 : vector<2x8xf32> to vector<2x8x1xf32>
    %cst_7 = arith.constant dense<0.000000e+00> : vector<2x1xf32>
    %11 = vector.multi_reduction <add>, %10, %cst_7 [1] : vector<2x8x1xf32> to vector<2x1xf32>
    %12 = vector.shape_cast %11 : vector<2x1xf32> to vector<2x1x1xf32>
    %cst_8 = arith.constant 1.250000e-01 : f32
    %13 = vector.broadcast %cst_8 : f32 to vector<2x1x1xf32>
    %14 = arith.mulf %12, %13 : vector<2x1x1xf32>
    %15 = vector.broadcast %14 : vector<2x1x1xf32> to vector<2x8x1xf32>
    %16 = arith.subf %10, %15 : vector<2x8x1xf32>
    %17 = arith.mulf %16, %16 : vector<2x8x1xf32>
    %cst_9 = arith.constant dense<0.000000e+00> : vector<2x1xf32>
    %18 = vector.multi_reduction <add>, %17, %cst_9 [1] : vector<2x8x1xf32> to vector<2x1xf32>
    %19 = vector.shape_cast %18 : vector<2x1xf32> to vector<2x1x1xf32>
    %cst_10 = arith.constant 1.250000e-01 : f32
    %20 = vector.broadcast %cst_10 : f32 to vector<2x1x1xf32>
    %21 = arith.mulf %19, %20 : vector<2x1x1xf32>
    %22 = math.sqrt %21 : vector<2x1x1xf32>
    %c0_11 = arith.constant 0 : index
    %23 = memref.load %arg1[%c0_11] : memref<1xf32, #tpu.memory_space<smem>>
    %cst_12 = arith.constant 9.99999974E-6 : f32
    %24 = vector.broadcast %cst_12 : f32 to vector<2x1x1xf32>
    %25 = arith.addf %22, %24 : vector<2x1x1xf32>
    %26 = vector.broadcast %23 : f32 to vector<2x1x1xf32>
    %27 = arith.divf %26, %25 : vector<2x1x1xf32>
    %c0_13 = arith.constant 0 : index
    %28 = memref.load %arg2[%c0_13] : memref<1xf32, #tpu.memory_space<smem>>
    %29 = arith.mulf %14, %27 : vector<2x1x1xf32>
    %30 = vector.broadcast %28 : f32 to vector<2x1x1xf32>
    %31 = arith.subf %30, %29 : vector<2x1x1xf32>
    %32 = vector.broadcast %27 : vector<2x1x1xf32> to vector<2x8x1xf32>
    %33 = arith.mulf %10, %32 : vector<2x8x1xf32>
    %34 = vector.broadcast %31 : vector<2x1x1xf32> to vector<2x8x1xf32>
    %35 = arith.addf %33, %34 : vector<2x8x1xf32>
    %36 = vector.shape_cast %5 : vector<2x128xf32> to vector<2x1x128xf32>
    %37 = vector.broadcast %35 : vector<2x8x1xf32> to vector<2x8x128xf32>
    %38 = vector.broadcast %36 : vector<2x1x128xf32> to vector<2x8x128xf32>
    %39 = arith.mulf %37, %38 : vector<2x8x128xf32>
    %40 = arith.addf %0, %39 : vector<2x8x128xf32>
    %c0_14 = arith.constant 0 : index
    %c0_15 = arith.constant 0 : index
    %c0_16 = arith.constant 0 : index
    %41 = vector.load %arg5[%c0_14, %c0_15, %c0_16] : memref<2x8x128xf32, #tpu.memory_space<vmem>>, vector<2x8x128xf32>
    tpu.vector_store %arg5[%c0_14, %c0_15, %c0_16], %40 {strides = array<i32>} : memref<2x8x128xf32, #tpu.memory_space<vmem>>, vector<2x8x128xf32>,
    return
  }
  func.func @transform_0(%arg0: i32) -> i32 {
    %c0_i32 = arith.constant 0 : i32
    %c0_i32_0 = arith.constant 0 : i32
    return %c0_i32 : i32
  }
  func.func @transform_1(%arg0: i32) -> i32 {
    %c0_i32 = arith.constant 0 : i32
    %c0_i32_0 = arith.constant 0 : i32
    return %c0_i32 : i32
  }
  func.func @transform_2(%arg0: i32) -> (i32, i32) {
    %c0_i32 = arith.constant 0 : i32
    %c0_i32_0 = arith.constant 0 : i32
    %c0_i32_1 = arith.constant 0 : i32
    return %c0_i32, %c0_i32_0 : i32, i32
  }
  func.func @transform_3(%arg0: i32) -> (i32, i32, i32) {
    %c0_i32 = arith.constant 0 : i32
    %c0_i32_0 = arith.constant 0 : i32
    %c0_i32_1 = arith.constant 0 : i32
    return %arg0, %c0_i32, %c0_i32_0 : i32, i32, i32
  }
  func.func @transform_4(%arg0: i32) -> (i32, i32, i32) {
    %c0_i32 = arith.constant 0 : i32
    %c0_i32_0 = arith.constant 0 : i32
    %c0_i32_1 = arith.constant 0 : i32
    return %arg0, %c0_i32, %c0_i32_0 : i32, i32, i32
  }
}

</mosaic_0001>

<bundles_post_ra>
// kernel: tpu_custom_call.1
= control target key start
LH: loop header
LB: loop body
LE: loop exit
PB: predicated region body
PF: predicated region fallthrough
CT: control target
= control target key end

     0   :  { %11 = vsyncpa [#allocation5], 0  ;;  %s516_s0 = inlined_call_operand.<no memory space> [shape: f32[1], index: 0, kind: input, shape index: {}]   ;;  %s517_s1 = inlined_call_operand.<no memory space> [shape: f32[1], index: 1, kind: input, shape index: {}]   ;;  %s518_s2 = inlined_call_operand.hbm [shape: f32[128,128], index: 2, kind: input, shape index: {}]   ;;  %s519_s3 = inlined_call_operand.hbm [shape: f32[2,8,128], index: 3, kind: input, shape index: {}]   ;;  %s520_s4 = inlined_call_operand.hbm [shape: f32[2,8,128], index: 4, kind: output, shape index: {}]  }
   0x1   :  { %12 = vsyncpa [#allocation8], 0 }
   0x2   :  { %13 = vsyncpa [#allocation6], 0  ;;  %s416_s15 = smov [#allocation4]  }
   0x3   :  { %s23_s16 = sshll.u32 %s416_s15, 4  ;;  %s24_s16 = int_to_ptr.vmem [resolvable:$true] %s23_s16 }
   0x4   :  { %s358_s17 = scalar_lea.vmem %s24_s16, 2048  ;;  %p363_p1 = scmp.lt.s32.totalorder %s24_s16, %s24_s16 }
   0x5   :  { %p359_p0 = scmp.ne.s32.totalorder %s24_s16, %s358_s17  ;;  %p364_p2 = scmp.lt.s32.totalorder %s358_s17, %s358_s17 }
   0x7   :  { %p365_p3 = por %p364_p2, %p363_p1 }
   0x9   :  { %p366_p4 = pnand %p365_p3, %p359_p0 }
   0xb   :  { %369 = shalt.err (!%p366_p4)
}
   0xc   :  { %s417_s18 = smov 128   ;;  %s418_s19 = smov 8  }
   0xd   :  { %29 = dma.hbm_to_vmem [thread:$0]  %s518_s2, 2048, %s24_s16, [#allocation5], %s417_s18, %s417_s18, %s418_s19  }
   0xe   :  { %s419_s22 = smov [#allocation7]  }
   0xf   :  { %s35_s23 = sshll.u32 %s419_s22, 4  ;;  %s36_s23 = int_to_ptr.vmem [resolvable:$true] %s35_s23 }
  0x10   :  { %s378_s24 = scalar_lea.vmem %s36_s23, 256  ;;  %p383_p6 = scmp.lt.s32.totalorder %s36_s23, %s36_s23 }
  0x11   :  { %p379_p5 = scmp.ne.s32.totalorder %s36_s23, %s378_s24  ;;  %p384_p7 = scmp.lt.s32.totalorder %s378_s24, %s378_s24 }
  0x13   :  { %p385_p8 = por %p384_p7, %p383_p6 }
  0x15   :  { %p386_p9 = pnand %p385_p8, %p379_p5 }
  0x17   :  { %389 = shalt.err (!%p386_p9)
}
  0x18   :  { %41 = dma.hbm_to_vmem [thread:$0]  %s519_s3, 256, %s36_s23, [#allocation8], %s417_s18, %s417_s18, %s418_s19  }
  0x19   :  { %410 = dma.done.wait [#allocation5], 2048  }
  0x1a   :  { %411 = vsyncadd [#allocation5], 4294965248 }
  0x1b   :  { %412 = dma.done.wait [#allocation8], 256  }
  0x1c   :  { %413 = vsyncadd [#allocation8], 4294967040  ;;  %v420_v0 = vmov 0.0   ;;  %vm421_vm0 = vmmov 0   ;;  %v79_v1 = vld [vmem:[#allocation4 + $0x78] sm:$0xff]  ;;  %v78_v2 = vld [vmem:[#allocation4 + $0x70] sm:$0xff]  ;;  %v159_v36 = vlaneseq }
  0x1d   :  { %299 = vmatprep.subr.mxu0 %v420_v0  ;;  %331 = vmatprep.mubr.msk.f32.mxu0 %vm421_vm0, %v420_v0  ;;  %v77_v3 = vld [vmem:[#allocation4 + $0x68] sm:$0xff]  ;;  %v76_v4 = vld [vmem:[#allocation4 + $0x60] sm:$0xff]  ;;  %v75_v7 = vld [vmem:[#allocation4 + $0x58] sm:$0xff]  ;;  %vm82_vm1 = vcmask 1041409   ;;  %v422_v34 = vmov 1966171168  }
  0x1e   :  { %300 = vmatpush3.msra.mxu0 %v79_v1  ;;  %v465_v5 = vld [vmem:[#allocation7] sm:$0xff]  ;;  %v467_v6 = vld [vmem:[#allocation7 + $0x8] sm:$0xff]  ;;  %v74_v10 = vld [vmem:[#allocation4 + $0x50] sm:$0xff]  ;;  %v157_v35 = vunpack.c.l.s4 %v422_v34  ;;  %v160_v38 = vshrl.u32 %v159_v36, 7 }
  0x1f   :  { %301 = vmatprep.subr.mxu0 %v420_v0  ;;  %v50_v8 = vrot.slane %v465_v5, 4  ;;  %v56_v9 = vrot.slane %v467_v6, 4  ;;  %v73_v13 = vld [vmem:[#allocation4 + $0x48] sm:$0xff]  ;;  %v72_v16 = vld [vmem:[#allocation4 + $0x40] sm:$0xff]  ;;  %v71_v19 = vld [vmem:[#allocation4 + $0x38] sm:$0xff] }
  0x20   :  { %302 = vmatpush3.msra.mxu0 %v78_v2  ;;  %v70_v20 = vld [vmem:[#allocation4 + $0x30] sm:$0xff]  ;;  %v69_v23 = vld [vmem:[#allocation4 + $0x28] sm:$0xff]  ;;  %v68_v24 = vld [vmem:[#allocation4 + $0x20] sm:$0xff]  ;;  %v158_v37 = vunpack.c.0.s8 %v157_v35  ;;  %v180_v42 = vsub.s32 0, %v160_v38  ;;  %v243_v35 = vstv %s516_s0  ;;  %s423_s0 = smov [#allocation9]  }
  0x21   :  { %303 = vmatprep.subr.mxu0 %v420_v0  ;;  %v51_v11 = vadd.f32 %v50_v8, %v465_v5  ;;  %v57_v12 = vadd.f32 %v56_v9, %v467_v6  ;;  %v67_v27 = vld [vmem:[#allocation4 + $0x18] sm:$0xff]  ;;  %v66_v28 = vld [vmem:[#allocation4 + $0x10] sm:$0xff]  ;;  %v65_v31 = vld [vmem:[#allocation4 + $0x8] sm:$0xff]  ;;  %s269_s29 = sshll.u32 %s423_s0, 4  ;;  %s270_s29 = int_to_ptr.vmem [resolvable:$true] %s269_s29 }
  0x22   :  { %304 = vmatpush3.msra.mxu0 %v77_v3  ;;  %v64_v32 = vld [vmem:[#allocation4] sm:$0xff]  ;;  %v161_v39 = vsub.s32 %v158_v37, %v160_v38  ;;  %v251_v38 = vstv %s517_s1  ;;  %s390_s1 = scalar_lea.vmem %s270_s29, 256  ;;  %p395_p11 = scmp.lt.s32.totalorder %s270_s29, %s270_s29 }
  0x23   :  { %305 = vmatprep.subr.mxu0 %v420_v0  ;;  %v52_v14 = vrot.slane %v51_v11, 2  ;;  %v58_v15 = vrot.slane %v57_v12, 2  ;;  %p391_p10 = scmp.ne.s32.totalorder %s270_s29, %s390_s1  ;;  %p396_p12 = scmp.lt.s32.totalorder %s390_s1, %s390_s1 }
  0x24   :  { %306 = vmatpush3.msra.mxu0 %v76_v4 }
  0x25   :  { %307 = vmatprep.subr.mxu0 %v420_v0  ;;  %v53_v17 = vadd.f32 %v52_v14, %v51_v11  ;;  %v59_v18 = vadd.f32 %v58_v15, %v57_v12  ;;  %p397_p13 = por %p396_p12, %p395_p11 }
  0x26   :  { %308 = vmatpush3.msra.mxu0 %v75_v7 }
  0x27   :  { %309 = vmatprep.subr.mxu0 %v420_v0  ;;  %v54_v21 = vrot.slane %v53_v17, 1  ;;  %v60_v22 = vrot.slane %v59_v18, 1  ;;  %p398_p0 = pnand %p397_p13, %p391_p10 }
  0x28   :  { %310 = vmatpush3.msra.mxu0 %v74_v10 }
  0x29   :  { %311 = vmatprep.subr.mxu0 %v420_v0  ;;  %v55_v25 = vadd.f32 %v54_v21, %v53_v17  ;;  %v61_v26 = vadd.f32 %v60_v22, %v59_v18 }
  0x2a   :  { %312 = vmatpush3.msra.mxu0 %v73_v13 }
  0x2b   :  { %313 = vmatprep.subr.mxu0 %v420_v0  ;;  %v62_v29 = vmul.f32 0.125, %v55_v25  ;;  %v63_v30 = vmul.f32 0.125, %v61_v26 }
  0x2c   :  { %314 = vmatpush3.msra.mxu0 %v72_v16 }
  0x2d   :  { %315 = vmatprep.subr.mxu0 %v420_v0  ;;  %v83_v33 = vsel %vm82_vm1, %v63_v30, %v62_v29 }
  0x2e   :  { %316 = vmatpush3.msra.mxu0 %v71_v19 }
  0x2f   :  { %317 = vmatprep.subr.mxu0 %v420_v0 }
  0x30   :  { %318 = vmatpush3.msra.mxu0 %v70_v20 }
  0x31   :  { %319 = vmatprep.subr.mxu0 %v420_v0 }
  0x32   :  { %320 = vmatpush3.msra.mxu0 %v69_v23 }
  0x33   :  { %321 = vmatprep.subr.mxu0 %v420_v0 }
  0x34   :  { %322 = vmatpush3.msra.mxu0 %v68_v24 }
  0x35   :  { %323 = vmatprep.subr.mxu0 %v420_v0 }
  0x36   :  { %324 = vmatpush3.msra.mxu0 %v67_v27 }
  0x37   :  { %325 = vmatprep.subr.mxu0 %v420_v0 }
  0x38   :  { %326 = vmatpush3.msra.mxu0 %v66_v28 }
  0x39   :  { %327 = vmatprep.subr.mxu0 %v420_v0 }
  0x3a   :  { %328 = vmatpush3.msra.mxu0 %v65_v31 }
  0x3b   :  { %329 = vmatprep.subr.mxu0 %v420_v0 }
  0x3c   :  { %330 = vmatpush3.msra.mxu0 %v64_v32 }
  0x3d   :  { %332 = vmatmul.mubr.f32.vlgmr.msra.gmra.mxu0 %v83_v33 }
  0xfd   :  { %v151_v40 = vpop.f32.mrf.mxu0 }
  0xfe   :  { %v162_v41 = vrot.slane %v151_v40, %v161_v39 }
  0xff   :  { %v333_v43 = vpop.f32.mrf.mxu0 }
 0x100   :  { %v163_v44 = vcombine.high %v162_v41, %v162_v41  ;;  %v170_v45 = vrot.slane %v162_v41, %v161_v39 }
 0x102   :  { %v177_v46 = vrot.slane %v163_v44, %v161_v39  ;;  %v486_v47 = vrot.slane %v170_v45, %v180_v42 }
 0x104   :  { %v188_v48 = vmul.f32 %v486_v47, %v465_v5  ;;  %v490_v49 = vrot.slane %v177_v46, %v180_v42 }
 0x106   :  { %190 = vadd.xlane.f32.xlu0 %v188_v48  ;;  %v189_v50 = vmul.f32 %v490_v49, %v467_v6 }
 0x10a   :  { %192 = vadd.xlane.f32.xlu0 %v189_v50 }
 0x18f   :  { %v191_v51 = vpop.xlane.xlu0 %190 }
 0x190   :  { %v194_v52 = vrot.slane %v191_v51, 4 }
 0x192   :  { %v195_v53 = vadd.f32 %v194_v52, %v191_v51 }
 0x193   :  { %v494_v54 = vpop.xlane.xlu0 %192 }
 0x194   :  { %v196_v55 = vrot.slane %v195_v53, 2  ;;  %v200_v56 = vrot.slane %v494_v54, 4 }
 0x196   :  { %v197_v57 = vadd.f32 %v196_v55, %v195_v53  ;;  %v201_v58 = vadd.f32 %v200_v56, %v494_v54 }
 0x198   :  { %v198_v59 = vrot.slane %v197_v57, 1  ;;  %v202_v60 = vrot.slane %v201_v58, 2 }
 0x19a   :  { %v199_v61 = vadd.f32 %v198_v59, %v197_v57  ;;  %v203_v62 = vadd.f32 %v202_v60, %v201_v58 }
 0x19c   :  { %v206_v63 = vmul.f32 0.125, %v199_v61  ;;  %v204_v0 = vrot.slane %v203_v62, 1 }
 0x19e   :  { %v208_v1 = vsub.f32 %v191_v51, %v206_v63  ;;  %v205_v2 = vadd.f32 %v204_v0, %v203_v62 }
 0x1a0   :  { %v210_v3 = vmul.f32 %v208_v1, %v208_v1  ;;  %v207_v4 = vmul.f32 0.125, %v205_v2 }
 0x1a2   :  { %v212_v7 = vrot.slane %v210_v3, 4  ;;  %v209_v8 = vsub.f32 %v494_v54, %v207_v4 }
 0x1a4   :  { %v213_v9 = vadd.f32 %v212_v7, %v210_v3  ;;  %v211_v10 = vmul.f32 %v209_v8, %v209_v8 }
 0x1a6   :  { %v214_v11 = vrot.slane %v213_v9, 2  ;;  %v218_v12 = vrot.slane %v211_v10, 4 }
 0x1a8   :  { %v215_v13 = vadd.f32 %v214_v11, %v213_v9  ;;  %v219_v14 = vadd.f32 %v218_v12, %v211_v10 }
 0x1aa   :  { %v216_v15 = vrot.slane %v215_v13, 1  ;;  %v220_v16 = vrot.slane %v219_v14, 2 }
 0x1ac   :  { %v217_v17 = vadd.f32 %v216_v15, %v215_v13  ;;  %v221_v18 = vadd.f32 %v220_v16, %v219_v14 }
 0x1ae   :  { %v224_v19 = vmul.f32 0.125, %v217_v17  ;;  %v222_v20 = vrot.slane %v221_v18, 1 }
 0x1b0   :  { %342 = vrsqrt.f32 %v224_v19  ;;  %v223_v21 = vadd.f32 %v222_v20, %v221_v18  ;;  %vm228_vm2 = vcmp.eq.f32.partialorder %v224_v19, inf  ;;  %v231_v25 = vand.u32 2147483648, %v224_v19 }
 0x1b1   :  { %vm230_vm3 = vcmp.eq.f32.partialorder %v224_v19, 0.0 }
 0x1b2   :  { %v225_v22 = vmul.f32 0.125, %v223_v21 }
 0x1b4   :  { %344 = vrsqrt.f32 %v225_v22  ;;  %vm235_vm4 = vcmp.eq.f32.partialorder %v225_v22, inf  ;;  %v238_v31 = vand.u32 2147483648, %v225_v22  ;;  %vm237_vm5 = vcmp.eq.f32.partialorder %v225_v22, 0.0 }
 0x1bd   :  { %v343_v23 = vpop.eup %342 }
 0x1be   :  { %v227_v24 = vmul.f32 %v343_v23, %v224_v19 }
 0x1c0   :  { %v229_v26 = vsel %vm228_vm2, %v224_v19, %v227_v24 }
 0x1c1   :  { %v232_v27 = vsel %vm230_vm3, %v231_v25, %v229_v26  ;;  %v345_v28 = vpop.eup %344 }
 0x1c2   :  { %v241_v29 = vadd.f32 1e-05, %v232_v27  ;;  %v234_v30 = vmul.f32 %v345_v28, %v225_v22 }
 0x1c4   :  { %346 = vrcp.f32 %v241_v29  ;;  %v236_v32 = vsel %vm235_vm4, %v225_v22, %v234_v30 }
 0x1c5   :  { %v239_v33 = vsel %vm237_vm5, %v238_v31, %v236_v32 }
 0x1c6   :  { %v242_v34 = vadd.f32 1e-05, %v239_v33 }
 0x1c8   :  { %348 = vrcp.f32 %v242_v34 }
 0x1d1   :  { %v347_v36 = vpop.eup %346 }
 0x1d2   :  { %v245_v37 = vmul.f32 %v347_v36, %v243_v35 }
 0x1d4   :  { %v249_v39 = vmul.f32 %v245_v37, %v206_v63  ;;  %v254_v42 = vmul.f32 %v245_v37, %v191_v51 }
 0x1d5   :  { %v349_v40 = vpop.eup %348 }
 0x1d6   :  { %v252_v41 = vsub.f32 %v251_v38, %v249_v39  ;;  %v247_v43 = vmul.f32 %v349_v40, %v243_v35 }
 0x1d8   :  { %v256_v44 = vadd.f32 %v254_v42, %v252_v41  ;;  %v250_v45 = vmul.f32 %v247_v43, %v207_v4  ;;  %v255_v50 = vmul.f32 %v247_v43, %v494_v54 }
 0x1da   :  { %v258_v46 = vmul.f32 %v256_v44, %v486_v47  ;;  %v253_v48 = vsub.f32 %v251_v38, %v250_v45 }
 0x1dc   :  { %v260_v52 = vadd.f32 %v258_v46, %v465_v5  ;;  %v257_v53 = vadd.f32 %v255_v50, %v253_v48 }
 0x1de   :  { %262 = vst [vmem:[#allocation9] sm:$0xff] %v260_v52  ;;  %v259_v55 = vmul.f32 %v257_v53, %v490_v49 }
 0x1e0   :  { %v261_v56 = vadd.f32 %v259_v55, %v467_v6 }
 0x1e2   :  { %263 = vst [vmem:[#allocation9 + $0x8] sm:$0xff] %v261_v56 }
 0x1e3   :  { %401 = shalt.err (!%p398_p0)
}
 0x1e4   :  { %275 = dma.vmem_to_hbm [thread:$0]  %s270_s29, 256, %s520_s4, [#allocation6], %s417_s18, %s417_s18, %s418_s19  }
 0x1e5   :  { %414 = dma.done.wait [#allocation6], 256  }
 0x1e6   :  { %415 = vsyncadd [#allocation6], 4294967040 }
 0x1e7   :  { %279 = vsyncpa [#allocation5], 1 }
 0x1e8   :  { %280 = vsyncpa [#allocation8], 1 }
 0x1e9   :  { %281 = vsyncpa [#allocation6], 1 }

// kernel: tpu_custom_call.1
= control target key start
LH: loop header
LB: loop body
LE: loop exit
PB: predicated region body
PF: predicated region fallthrough
CT: control target
= control target key end

     0   :  { %11 = vsyncpa [#allocation5], 0  ;;  %s516_s0 = inlined_call_operand.<no memory space> [shape: f32[1], index: 0, kind: input, shape index: {}]   ;;  %s517_s1 = inlined_call_operand.<no memory space> [shape: f32[1], index: 1, kind: input, shape index: {}]   ;;  %s518_s2 = inlined_call_operand.hbm [shape: f32[128,128], index: 2, kind: input, shape index: {}]   ;;  %s519_s3 = inlined_call_operand.hbm [shape: f32[2,8,128], index: 3, kind: input, shape index: {}]   ;;  %s520_s4 = inlined_call_operand.hbm [shape: f32[2,8,128], index: 4, kind: output, shape index: {}]  }
   0x1   :  { %12 = vsyncpa [#allocation8], 0 }
   0x2   :  { %13 = vsyncpa [#allocation6], 0  ;;  %s416_s15 = smov [#allocation4]  }
   0x3   :  { %s23_s16 = sshll.u32 %s416_s15, 4  ;;  %s24_s16 = int_to_ptr.vmem [resolvable:$true] %s23_s16 }
   0x4   :  { %s358_s17 = scalar_lea.vmem %s24_s16, 2048  ;;  %p363_p1 = scmp.lt.s32.totalorder %s24_s16, %s24_s16 }
   0x5   :  { %p359_p0 = scmp.ne.s32.totalorder %s24_s16, %s358_s17  ;;  %p364_p2 = scmp.lt.s32.totalorder %s358_s17, %s358_s17 }
   0x7   :  { %p365_p3 = por %p364_p2, %p363_p1 }
   0x9   :  { %p366_p4 = pnand %p365_p3, %p359_p0 }
   0xb   :  { %369 = shalt.err (!%p366_p4)
}
   0xc   :  { %s417_s18 = smov 128   ;;  %s418_s19 = smov 8  }
   0xd   :  { %29 = dma.hbm_to_vmem [thread:$0]  %s518_s2, 2048, %s24_s16, [#allocation5], %s417_s18, %s417_s18, %s418_s19  }
   0xe   :  { %s419_s22 = smov [#allocation7]  }
   0xf   :  { %s35_s23 = sshll.u32 %s419_s22, 4  ;;  %s36_s23 = int_to_ptr.vmem [resolvable:$true] %s35_s23 }
  0x10   :  { %s378_s24 = scalar_lea.vmem %s36_s23, 256  ;;  %p383_p6 = scmp.lt.s32.totalorder %s36_s23, %s36_s23 }
  0x11   :  { %p379_p5 = scmp.ne.s32.totalorder %s36_s23, %s378_s24  ;;  %p384_p7 = scmp.lt.s32.totalorder %s378_s24, %s378_s24 }
  0x13   :  { %p385_p8 = por %p384_p7, %p383_p6 }
  0x15   :  { %p386_p9 = pnand %p385_p8, %p379_p5 }
  0x17   :  { %389 = shalt.err (!%p386_p9)
}
  0x18   :  { %41 = dma.hbm_to_vmem [thread:$0]  %s519_s3, 256, %s36_s23, [#allocation8], %s417_s18, %s417_s18, %s418_s19  }
  0x19   :  { %410 = dma.done.wait [#allocation5], 2048  }
  0x1a   :  { %411 = vsyncadd [#allocation5], 4294965248 }
  0x1b   :  { %412 = dma.done.wait [#allocation8], 256  }
  0x1c   :  { %413 = vsyncadd [#allocation8], 4294967040  ;;  %v420_v0 = vmov 0.0   ;;  %vm421_vm0 = vmmov 0   ;;  %v79_v1 = vld [vmem:[#allocation4 + $0x78] sm:$0xff]  ;;  %v78_v2 = vld [vmem:[#allocation4 + $0x70] sm:$0xff]  ;;  %v159_v36 = vlaneseq }
  0x1d   :  { %299 = vmatprep.subr.mxu0 %v420_v0  ;;  %331 = vmatprep.mubr.msk.f32.mxu0 %vm421_vm0, %v420_v0  ;;  %v77_v3 = vld [vmem:[#allocation4 + $0x68] sm:$0xff]  ;;  %v76_v4 = vld [vmem:[#allocation4 + $0x60] sm:$0xff]  ;;  %v75_v7 = vld [vmem:[#allocation4 + $0x58] sm:$0xff]  ;;  %vm82_vm1 = vcmask 1041409   ;;  %v422_v34 = vmov 1966171168  }
  0x1e   :  { %300 = vmatpush3.msra.mxu0 %v79_v1  ;;  %v465_v5 = vld [vmem:[#allocation7] sm:$0xff]  ;;  %v467_v6 = vld [vmem:[#allocation7 + $0x8] sm:$0xff]  ;;  %v74_v10 = vld [vmem:[#allocation4 + $0x50] sm:$0xff]  ;;  %v157_v35 = vunpack.c.l.s4 %v422_v34  ;;  %v160_v38 = vshrl.u32 %v159_v36, 7 }
  0x1f   :  { %301 = vmatprep.subr.mxu0 %v420_v0  ;;  %v50_v8 = vrot.slane %v465_v5, 4  ;;  %v56_v9 = vrot.slane %v467_v6, 4  ;;  %v73_v13 = vld [vmem:[#allocation4 + $0x48] sm:$0xff]  ;;  %v72_v16 = vld [vmem:[#allocation4 + $0x40] sm:$0xff]  ;;  %v71_v19 = vld [vmem:[#allocation4 + $0x38] sm:$0xff] }
  0x20   :  { %302 = vmatpush3.msra.mxu0 %v78_v2  ;;  %v70_v20 = vld [vmem:[#allocation4 + $0x30] sm:$0xff]  ;;  %v69_v23 = vld [vmem:[#allocation4 + $0x28] sm:$0xff]  ;;  %v68_v24 = vld [vmem:[#allocation4 + $0x20] sm:$0xff]  ;;  %v158_v37 = vunpack.c.0.s8 %v157_v35  ;;  %v180_v42 = vsub.s32 0, %v160_v38  ;;  %v243_v35 = vstv %s516_s0  ;;  %s423_s0 = smov [#allocation9]  }
  0x21   :  { %303 = vmatprep.subr.mxu0 %v420_v0  ;;  %v51_v11 = vadd.f32 %v50_v8, %v465_v5  ;;  %v57_v12 = vadd.f32 %v56_v9, %v467_v6  ;;  %v67_v27 = vld [vmem:[#allocation4 + $0x18] sm:$0xff]  ;;  %v66_v28 = vld [vmem:[#allocation4 + $0x10] sm:$0xff]  ;;  %v65_v31 = vld [vmem:[#allocation4 + $0x8] sm:$0xff]  ;;  %s269_s29 = sshll.u32 %s423_s0, 4  ;;  %s270_s29 = int_to_ptr.vmem [resolvable:$true] %s269_s29 }
  0x22   :  { %304 = vmatpush3.msra.mxu0 %v77_v3  ;;  %v64_v32 = vld [vmem:[#allocation4] sm:$0xff]  ;;  %v161_v39 = vsub.s32 %v158_v37, %v160_v38  ;;  %v251_v38 = vstv %s517_s1  ;;  %s390_s1 = scalar_lea.vmem %s270_s29, 256  ;;  %p395_p11 = scmp.lt.s32.totalorder %s270_s29, %s270_s29 }
  0x23   :  { %305 = vmatprep.subr.mxu0 %v420_v0  ;;  %v52_v14 = vrot.slane %v51_v11, 2  ;;  %v58_v15 = vrot.slane %v57_v12, 2  ;;  %p391_p10 = scmp.ne.s32.totalorder %s270_s29, %s390_s1  ;;  %p396_p12 = scmp.lt.s32.totalorder %s390_s1, %s390_s1 }
  0x24   :  { %306 = vmatpush3.msra.mxu0 %v76_v4 }
  0x25   :  { %307 = vmatprep.subr.mxu0 %v420_v0  ;;  %v53_v17 = vadd.f32 %v52_v14, %v51_v11  ;;  %v59_v18 = vadd.f32 %v58_v15, %v57_v12  ;;  %p397_p13 = por %p396_p12, %p395_p11 }
  0x26   :  { %308 = vmatpush3.msra.mxu0 %v75_v7 }
  0x27   :  { %309 = vmatprep.subr.mxu0 %v420_v0  ;;  %v54_v21 = vrot.slane %v53_v17, 1  ;;  %v60_v22 = vrot.slane %v59_v18, 1  ;;  %p398_p0 = pnand %p397_p13, %p391_p10 }
  0x28   :  { %310 = vmatpush3.msra.mxu0 %v74_v10 }
  0x29   :  { %311 = vmatprep.subr.mxu0 %v420_v0  ;;  %v55_v25 = vadd.f32 %v54_v21, %v53_v17  ;;  %v61_v26 = vadd.f32 %v60_v22, %v59_v18 }
  0x2a   :  { %312 = vmatpush3.msra.mxu0 %v73_v13 }
  0x2b   :  { %313 = vmatprep.subr.mxu0 %v420_v0  ;;  %v62_v29 = vmul.f32 0.125, %v55_v25  ;;  %v63_v30 = vmul.f32 0.125, %v61_v26 }
  0x2c   :  { %314 = vmatpush3.msra.mxu0 %v72_v16 }
  0x2d   :  { %315 = vmatprep.subr.mxu0 %v420_v0  ;;  %v83_v33 = vsel %vm82_vm1, %v63_v30, %v62_v29 }
  0x2e   :  { %316 = vmatpush3.msra.mxu0 %v71_v19 }
  0x2f   :  { %317 = vmatprep.subr.mxu0 %v420_v0 }
  0x30   :  { %318 = vmatpush3.msra.mxu0 %v70_v20 }
  0x31   :  { %319 = vmatprep.subr.mxu0 %v420_v0 }
  0x32   :  { %320 = vmatpush3.msra.mxu0 %v69_v23 }
  0x33   :  { %321 = vmatprep.subr.mxu0 %v420_v0 }
  0x34   :  { %322 = vmatpush3.msra.mxu0 %v68_v24 }
  0x35   :  { %323 = vmatprep.subr.mxu0 %v420_v0 }
  0x36   :  { %324 = vmatpush3.msra.mxu0 %v67_v27 }
  0x37   :  { %325 = vmatprep.subr.mxu0 %v420_v0 }
  0x38   :  { %326 = vmatpush3.msra.mxu0 %v66_v28 }
  0x39   :  { %327 = vmatprep.subr.mxu0 %v420_v0 }
  0x3a   :  { %328 = vmatpush3.msra.mxu0 %v65_v31 }
  0x3b   :  { %329 = vmatprep.subr.mxu0 %v420_v0 }
  0x3c   :  { %330 = vmatpush3.msra.mxu0 %v64_v32 }
  0x3d   :  { %332 = vmatmul.mubr.f32.vlgmr.msra.gmra.mxu0 %v83_v33 }
  0xfd   :  { %v151_v40 = vpop.f32.mrf.mxu0 }
  0xfe   :  { %v162_v41 = vrot.slane %v151_v40, %v161_v39 }
  0xff   :  { %v333_v43 = vpop.f32.mrf.mxu0 }
 0x100   :  { %v163_v44 = vcombine.high %v162_v41, %v162_v41  ;;  %v170_v45 = vrot.slane %v162_v41, %v161_v39 }
 0x102   :  { %v177_v46 = vrot.slane %v163_v44, %v161_v39  ;;  %v486_v47 = vrot.slane %v170_v45, %v180_v42 }
 0x104   :  { %v188_v48 = vmul.f32 %v486_v47, %v465_v5  ;;  %v490_v49 = vrot.slane %v177_v46, %v180_v42 }
 0x106   :  { %190 = vadd.xlane.f32.xlu0 %v188_v48  ;;  %v189_v50 = vmul.f32 %v490_v49, %v467_v6 }
 0x10a   :  { %192 = vadd.xlane.f32.xlu0 %v189_v50 }
 0x18f   :  { %v191_v51 = vpop.xlane.xlu0 %190 }
 0x190   :  { %v194_v52 = vrot.slane %v191_v51, 4 }
 0x192   :  { %v195_v53 = vadd.f32 %v194_v52, %v191_v51 }
 0x193   :  { %v494_v54 = vpop.xlane.xlu0 %192 }
 0x194   :  { %v196_v55 = vrot.slane %v195_v53, 2  ;;  %v200_v56 = vrot.slane %v494_v54, 4 }
 0x196   :  { %v197_v57 = vadd.f32 %v196_v55, %v195_v53  ;;  %v201_v58 = vadd.f32 %v200_v56, %v494_v54 }
 0x198   :  { %v198_v59 = vrot.slane %v197_v57, 1  ;;  %v202_v60 = vrot.slane %v201_v58, 2 }
 0x19a   :  { %v199_v61 = vadd.f32 %v198_v59, %v197_v57  ;;  %v203_v62 = vadd.f32 %v202_v60, %v201_v58 }
 0x19c   :  { %v206_v63 = vmul.f32 0.125, %v199_v61  ;;  %v204_v0 = vrot.slane %v203_v62, 1 }
 0x19e   :  { %v208_v1 = vsub.f32 %v191_v51, %v206_v63  ;;  %v205_v2 = vadd.f32 %v204_v0, %v203_v62 }
 0x1a0   :  { %v210_v3 = vmul.f32 %v208_v1, %v208_v1  ;;  %v207_v4 = vmul.f32 0.125, %v205_v2 }
 0x1a2   :  { %v212_v7 = vrot.slane %v210_v3, 4  ;;  %v209_v8 = vsub.f32 %v494_v54, %v207_v4 }
 0x1a4   :  { %v213_v9 = vadd.f32 %v212_v7, %v210_v3  ;;  %v211_v10 = vmul.f32 %v209_v8, %v209_v8 }
 0x1a6   :  { %v214_v11 = vrot.slane %v213_v9, 2  ;;  %v218_v12 = vrot.slane %v211_v10, 4 }
 0x1a8   :  { %v215_v13 = vadd.f32 %v214_v11, %v213_v9  ;;  %v219_v14 = vadd.f32 %v218_v12, %v211_v10 }
 0x1aa   :  { %v216_v15 = vrot.slane %v215_v13, 1  ;;  %v220_v16 = vrot.slane %v219_v14, 2 }
 0x1ac   :  { %v217_v17 = vadd.f32 %v216_v15, %v215_v13  ;;  %v221_v18 = vadd.f32 %v220_v16, %v219_v14 }
 0x1ae   :  { %v224_v19 = vmul.f32 0.125, %v217_v17  ;;  %v222_v20 = vrot.slane %v221_v18, 1 }
 0x1b0   :  { %342 = vrsqrt.f32 %v224_v19  ;;  %v223_v21 = vadd.f32 %v222_v20, %v221_v18  ;;  %vm228_vm2 = vcmp.eq.f32.partialorder %v224_v19, inf  ;;  %v231_v25 = vand.u32 2147483648, %v224_v19 }
 0x1b1   :  { %vm230_vm3 = vcmp.eq.f32.partialorder %v224_v19, 0.0 }
 0x1b2   :  { %v225_v22 = vmul.f32 0.125, %v223_v21 }
 0x1b4   :  { %344 = vrsqrt.f32 %v225_v22  ;;  %vm235_vm4 = vcmp.eq.f32.partialorder %v225_v22, inf  ;;  %v238_v31 = vand.u32 2147483648, %v225_v22  ;;  %vm237_vm5 = vcmp.eq.f32.partialorder %v225_v22, 0.0 }
 0x1bd   :  { %v343_v23 = vpop.eup %342 }
 0x1be   :  { %v227_v24 = vmul.f32 %v343_v23, %v224_v19 }
 0x1c0   :  { %v229_v26 = vsel %vm228_vm2, %v224_v19, %v227_v24 }
 0x1c1   :  { %v232_v27 = vsel %vm230_vm3, %v231_v25, %v229_v26  ;;  %v345_v28 = vpop.eup %344 }
 0x1c2   :  { %v241_v29 = vadd.f32 1e-05, %v232_v27  ;;  %v234_v30 = vmul.f32 %v345_v28, %v225_v22 }
 0x1c4   :  { %346 = vrcp.f32 %v241_v29  ;;  %v236_v32 = vsel %vm235_vm4, %v225_v22, %v234_v30 }
 0x1c5   :  { %v239_v33 = vsel %vm237_vm5, %v238_v31, %v236_v32 }
 0x1c6   :  { %v242_v34 = vadd.f32 1e-05, %v239_v33 }
 0x1c8   :  { %348 = vrcp.f32 %v242_v34 }
 0x1d1   :  { %v347_v36 = vpop.eup %346 }
 0x1d2   :  { %v245_v37 = vmul.f32 %v347_v36, %v243_v35 }
 0x1d4   :  { %v249_v39 = vmul.f32 %v245_v37, %v206_v63  ;;  %v254_v42 = vmul.f32 %v245_v37, %v191_v51 }
 0x1d5   :  { %v349_v40 = vpop.eup %348 }
 0x1d6   :  { %v252_v41 = vsub.f32 %v251_v38, %v249_v39  ;;  %v247_v43 = vmul.f32 %v349_v40, %v243_v35 }
 0x1d8   :  { %v256_v44 = vadd.f32 %v254_v42, %v252_v41  ;;  %v250_v45 = vmul.f32 %v247_v43, %v207_v4  ;;  %v255_v50 = vmul.f32 %v247_v43, %v494_v54 }
 0x1da   :  { %v258_v46 = vmul.f32 %v256_v44, %v486_v47  ;;  %v253_v48 = vsub.f32 %v251_v38, %v250_v45 }
 0x1dc   :  { %v260_v52 = vadd.f32 %v258_v46, %v465_v5  ;;  %v257_v53 = vadd.f32 %v255_v50, %v253_v48 }
 0x1de   :  { %262 = vst [vmem:[#allocation9] sm:$0xff] %v260_v52  ;;  %v259_v55 = vmul.f32 %v257_v53, %v490_v49 }
 0x1e0   :  { %v261_v56 = vadd.f32 %v259_v55, %v467_v6 }
 0x1e2   :  { %263 = vst [vmem:[#allocation9 + $0x8] sm:$0xff] %v261_v56 }
 0x1e3   :  { %401 = shalt.err (!%p398_p0)
}
 0x1e4   :  { %275 = dma.vmem_to_hbm [thread:$0]  %s270_s29, 256, %s520_s4, [#allocation6], %s417_s18, %s417_s18, %s418_s19  }
 0x1e5   :  { %414 = dma.done.wait [#allocation6], 256  }
 0x1e6   :  { %415 = vsyncadd [#allocation6], 4294967040 }
 0x1e7   :  { %279 = vsyncpa [#allocation5], 1 }
 0x1e8   :  { %280 = vsyncpa [#allocation8], 1 }
 0x1e9   :  { %281 = vsyncpa [#allocation6], 1 }

</bundles_post_ra>
